<compile_context>
chip_gen: v6e
topology: v6e:2x2x1
jax: 0.10.0
libtpu: 0.0.40
codegen_flags: <defaults>
</compile_context>

<pallas_src>
import functools

import jax
import jax.numpy as jnp
from jax.experimental import pallas as pl
from jax.experimental.pallas import tpu as pltpu

_LANE = 128
_FUSED_MAX_NODES = 1024          # padded-node bound for the fused fast path
_VMEM_RESIDENT_CAP = 40 << 20    # resident-H selection threshold
_VMEM_LIMIT_CAP = 48 << 20       # always below v7x's 64 MiB per-TC VMEM


# ---------------------------------------------------------------------------
# Kernels
# ---------------------------------------------------------------------------
def _fused_gcn_kernel(a_ref, d_ref, x_ref,
                      w1_ref, b1_ref, w2_ref, b2_ref, w3_ref, b3_ref, o_ref):
    """Whole 3-layer GCN in one un-gridded call (small graphs, all in VMEM)."""
    a = a_ref[...]                    # bf16 [Np, Np]   (A + I, binary -> exact)
    d = d_ref[...]                    # f32  [Np, 1]    (D^-1/2)

    def layer(h_in, w_ref, b_ref, relu):
        h = jnp.dot(h_in, w_ref[...], preferred_element_type=jnp.float32)
        h = (d * h).astype(jnp.bfloat16)                 # right D^-1/2 scale
        h = jnp.dot(a, h, preferred_element_type=jnp.float32)
        h = d * h + b_ref[...]                           # left scale + bias (f32)
        if relu:
            h = jnp.maximum(h, 0.0)
        return h

    h = layer(x_ref[...], w1_ref, b1_ref, True).astype(jnp.bfloat16)
    # F.dropout(x, training=self.training): inference -> identity.
    # TODO(synk): training-mode dropout (p=0.5) would use pltpu.prng_* masking.
    h = layer(h, w2_ref, b2_ref, True).astype(jnp.bfloat16)
    o_ref[...] = layer(h, w3_ref, b3_ref, False).astype(o_ref.dtype)


def _xw_kernel(d_ref, x_ref, w_ref, o_ref):
    """o[j] = d[j] * (x[j] @ W)   (feature transform + right D^-1/2 scaling)."""
    xw = jnp.dot(x_ref[...], w_ref[...], preferred_element_type=jnp.float32)
    o_ref[...] = (d_ref[...] * xw).astype(o_ref.dtype)


def _agg_kernel(a_ref, h_ref, d_ref, b_ref, o_ref, acc_ref,
                *, apply_relu, tk, resident_h):
    """out[i] = act(d[i] * sum_k (A+I)[i,k] @ H[k] + b)   (tiled over k)."""
    k = pl.program_id(1)

    @pl.when(k == 0)
    def _():
        acc_ref[...] = jnp.zeros_like(acc_ref)

    if resident_h:
        # H is VMEM-resident (constant block index -> DMA'd once); slice the
        # current k block out of it.
        start = pl.multiple_of(k * tk, tk)
        h_blk = h_ref[pl.ds(start, tk), :]
    else:
        h_blk = h_ref[...]
    acc_ref[...] += jnp.dot(a_ref[...], h_blk,
                            preferred_element_type=jnp.float32)

    @pl.when(k == pl.num_programs(1) - 1)
    def _():
        out = d_ref[...] * acc_ref[...] + b_ref[...]     # f32 epilogue
        if apply_relu:
            out = jnp.maximum(out, 0.0)
        o_ref[...] = out.astype(o_ref.dtype)


# ---------------------------------------------------------------------------
# Helpers
# ---------------------------------------------------------------------------
def _round_up(x, m):
    return ((x + m - 1) // m) * m


def _pad2(x, rows, cols):
    r, c = x.shape
    return jnp.pad(x, ((0, rows - r), (0, cols - c)))


def _clamp_vmem(byts):
    return int(min(max(byts, 16 << 20), _VMEM_LIMIT_CAP))


def _build_graph(edge_index, num_nodes):
    """Binary A+I (duplicate edges scatter-added, self-loops added, matching
    PyG gcn_norm) plus the D^-1/2 vector."""
    src, dst = edge_index[0], edge_index[1]
    adj = jnp.zeros((num_nodes, num_nodes), jnp.float32)
    adj = adj.at[dst, src].add(1.0)                      # message flows src -> dst
    adj = adj + jnp.eye(num_nodes, dtype=jnp.float32)    # self-loops
    deg = adj.sum(axis=1)
    d_inv_sqrt = jnp.where(deg > 0.0,
                           jax.lax.rsqrt(jnp.maximum(deg, 1e-12)), 0.0)
    return adj, d_inv_sqrt


def prepare_graph(edge_index, num_nodes, padded_nodes):
    """O(N^2) graph prep.  For a static graph, call once and reuse the result
    across forwards (it is shared by all 3 layers anyway)."""
    adj, d = _build_graph(edge_index, num_nodes)
    a_p = _pad2(adj, padded_nodes, padded_nodes).astype(jnp.bfloat16)
    d_p = _pad2(d[:, None], padded_nodes, 1)             # f32 [Np, 1]
    return a_p, d_p


def _choose_tiling(n, f_in, hidden, n_cls):
    """Returns (tile, padded_nodes).  tile=None -> fused single-kernel path."""
    maxf = max(_round_up(f_in, _LANE), _round_up(hidden, _LANE),
               _round_up(n_cls, _LANE))
    np_small = _round_up(max(n, 1), _LANE)
    fused_bytes = 2 * np_small * np_small * 2 + 8 * np_small * maxf * 4 + (8 << 20)
    if np_small <= _FUSED_MAX_NODES and fused_bytes <= _VMEM_RESIDENT_CAP:
        return None, np_small
    tile = 512 if n > 1024 else 256
    # Guarantee >= 2 row blocks so both v7x TensorCores get work.
    while tile > 128 and _round_up(n, tile) // tile < 2:
        tile //= 2
    return tile, _round_up(n, tile)


# ---------------------------------------------------------------------------
# Fused fast path (small graphs)
# ---------------------------------------------------------------------------
def _fused_forward(a_p, d_p, x_p, w1, b1, w2, b2, w3, b3):
    np_ = a_p.shape[0]
    fp, hp, cp = x_p.shape[1], w1.shape[1], w3.shape[1]
    maxf = max(fp, hp, cp)
    vmem = _clamp_vmem(2 * (a_p.size * 2 + np_ * 4 + x_p.size * 2
                            + (w1.size + w2.size + w3.size) * 2
                            + (2 * hp + cp) * 4 + np_ * cp * 4)
                       + 6 * np_ * maxf * 4 + (4 << 20))
    # No grid: every operand is a whole-array VMEM block, single invocation,
    # zero intermediate HBM traffic.  (Single TensorCore -- fine at this size.)
    return pl.pallas_call(
        _fused_gcn_kernel,
        out_shape=jax.ShapeDtypeStruct((np_, cp), jnp.float32),
        compiler_params=pltpu.CompilerParams(vmem_limit_bytes=vmem),
    )(a_p, d_p, x_p, w1, b1, w2, b2, w3, b3)


# ---------------------------------------------------------------------------
# Streaming path: one GCNConv layer = two tiled pallas_calls
# ---------------------------------------------------------------------------
def _gcn_layer(a_p, d_p, x_p, w, b, tile, *, relu, out_dtype):
    np_ = a_p.shape[0]
    f_in = x_p.shape[1]
    f_out = w.shape[1]
    tm = tk = tile

    # (1) scaled feature transform: H[j] = d_j * (X[j] @ W)
    xw_vmem = _clamp_vmem(2 * (tm * 4 + tm * f_in * 2 + f_in * f_out * 2
                               + tm * f_out * 2) + (4 << 20))
    xw = pl.pallas_call(
        _xw_kernel,
        out_shape=jax.ShapeDtypeStruct((np_, f_out), jnp.bfloat16),
        grid_spec=pltpu.PrefetchScalarGridSpec(
            num_scalar_prefetch=0,
            grid=(np_ // tm,),
            in_specs=[pl.BlockSpec((tm, 1), lambda i: (i, 0)),
                      pl.BlockSpec((tm, f_in), lambda i: (i, 0)),
                      pl.BlockSpec((f_in, f_out), lambda i: (0, 0))],
            out_specs=pl.BlockSpec((tm, f_out), lambda i: (i, 0))),
        compiler_params=pltpu.CompilerParams(
            dimension_semantics=("parallel",),
            vmem_limit_bytes=xw_vmem),
    )(d_p, x_p, w)

    # (2) aggregation: out[i] = act(d_i * sum_k A[i,k] @ H[k] + b)
    ob = jnp.dtype(out_dtype).itemsize
    common = 2 * tm * tk * 2 + 2 * tm * 4 + 2 * f_out * 4 \
        + 2 * tm * f_out * ob + tm * f_out * 4
    resident_bytes = common + 2 * np_ * f_out * 2 + (4 << 20)
    resident = resident_bytes <= _VMEM_RESIDENT_CAP
    if resident:
        # Whole XWd stays VMEM-resident (constant block index -> fetched once).
        h_spec = pl.BlockSpec((np_, f_out), lambda i, k: (0, 0))
        agg_vmem = _clamp_vmem(resident_bytes)
    else:
        h_spec = pl.BlockSpec((tk, f_out), lambda i, k: (k, 0))
        agg_vmem = _clamp_vmem(common + 2 * tk * f_out * 2 + (4 << 20))

    # TODO(synk): for sparse graphs, prefetch a block-CSR tile list via
    # PrefetchScalarGridSpec and make the k index_map data-dependent so zero
    # A tiles are never DMA'd (10-50x HBM traffic reduction on real graphs).
    kern = functools.partial(_agg_kernel, apply_relu=relu, tk=tk,
                             resident_h=resident)
    out = pl.pallas_call(
        kern,
        out_shape=jax.ShapeDtypeStruct((np_, f_out), out_dtype),
        grid_spec=pltpu.PrefetchScalarGridSpec(
            num_scalar_prefetch=0,
            grid=(np_ // tm, np_ // tk),
            in_specs=[pl.BlockSpec((tm, tk), lambda i, k: (i, k)),
                      h_spec,
                      pl.BlockSpec((tm, 1), lambda i, k: (i, 0)),
                      pl.BlockSpec((1, f_out), lambda i, k: (0, 0))],
            out_specs=pl.BlockSpec((tm, f_out), lambda i, k: (i, 0)),
            scratch_shapes=[pltpu.VMEM((tm, f_out), jnp.float32)]),
        compiler_params=pltpu.CompilerParams(
            dimension_semantics=("parallel", "arbitrary"),
            vmem_limit_bytes=agg_vmem),
    )(a_p, xw, d_p, b)
    return out


# ---------------------------------------------------------------------------
# Full forward
# ---------------------------------------------------------------------------
def _forward_padded(x, a_p, d_p, params, tile):
    n, f_in = x.shape
    np_ = a_p.shape[0]
    hidden = params["w1"].shape[1]
    n_cls = params["w3"].shape[1]

    fp = _round_up(f_in, _LANE)
    hp = _round_up(hidden, _LANE)
    cp = _round_up(n_cls, _LANE)

    x_p = _pad2(x, np_, fp).astype(jnp.bfloat16)
    w1 = _pad2(params["w1"], fp, hp).astype(jnp.bfloat16)
    b1 = _pad2(params["b1"], 1, hp)
    w2 = _pad2(params["w2"], hp, hp).astype(jnp.bfloat16)
    b2 = _pad2(params["b2"], 1, hp)
    w3 = _pad2(params["w3"], hp, cp).astype(jnp.bfloat16)
    b3 = _pad2(params["b3"], 1, cp)

    # NOTE: padded node rows have d_i = 0, so their intermediate value is
    # relu(b) "garbage"; it is harmless because the corresponding A columns are
    # zero and the final [:n] slice drops them, but do not reuse those rows for
    # any per-row reduction without masking.
    if tile is None:
        out = _fused_forward(a_p, d_p, x_p, w1, b1, w2, b2, w3, b3)
    else:
        h = _gcn_layer(a_p, d_p, x_p, w1, b1, tile, relu=True,
                       out_dtype=jnp.bfloat16)
        # F.dropout(x, training=self.training): inference -> identity.
        h = _gcn_layer(a_p, d_p, h, w2, b2, tile, relu=True,
                       out_dtype=jnp.bfloat16)
        out = _gcn_layer(a_p, d_p, h, w3, b3, tile, relu=False,
                         out_dtype=jnp.float32)
    return out[:n, :n_cls]


def gcn_forward(x, edge_index, params):
    """Convenience entry point.  For a static graph, hoist prepare_graph()
    (the O(N^2) scatter/pad/cast glue) out of the per-forward path and call
    _forward_padded directly with the cached (a_p, d_p)."""
    n, f_in = x.shape
    hidden = params["w1"].shape[1]
    n_cls = params["w3"].shape[1]
    tile, np_ = _choose_tiling(n, f_in, hidden, n_cls)
    a_p, d_p = prepare_graph(edge_index, n, np_)
    return _forward_padded(x, a_p, d_p, params, tile)


def _reference_forward(x, edge_index, params):
    adj, d = _build_graph(edge_index, x.shape[0])
    a_hat = adj * d[:, None] * d[None, :]
    h = a_hat @ (x @ params["w1"]) + params["b1"]
    h = jnp.maximum(h, 0.0)
    h = a_hat @ (h @ params["w2"]) + params["b2"]
    h = jnp.maximum(h, 0.0)
    return a_hat @ (h @ params["w3"]) + params["b3"]


def init_params(key, num_feature_in, hidden_dim, num_classes):
    k1, k2, k3, k4, k5, k6 = jax.random.split(key, 6)

    def glorot(k, fan_in, fan_out):
        scale = jnp.sqrt(6.0 / (fan_in + fan_out))
        return jax.random.uniform(k, (fan_in, fan_out), jnp.float32,
                                  -scale, scale)

    return {
        "w1": glorot(k1, num_feature_in, hidden_dim),
        "b1": jax.random.uniform(k4, (1, hidden_dim), jnp.float32, -0.1, 0.1),
        "w2": glorot(k2, hidden_dim, hidden_dim),
        "b2": jax.random.uniform(k5, (1, hidden_dim), jnp.float32, -0.1, 0.1),
        "w3": glorot(k3, hidden_dim, num_classes),
        "b3": jax.random.uniform(k6, (1, num_classes), jnp.float32, -0.1, 0.1),
    }


if __name__ == "__main__":
    def _run_case(num_nodes, num_edges, f_in, hidden, classes, case):
        key = jax.random.fold_in(jax.random.PRNGKey(0), case)
        k_x, k_e, k_p = jax.random.split(key, 3)
        x = jax.random.normal(k_x, (num_nodes, f_in), jnp.float32)
        edge_index = jax.random.randint(k_e, (2, num_edges), 0, num_nodes,
                                        dtype=jnp.int32)
        params = init_params(k_p, f_in, hidden, classes)
        out = jax.block_until_ready(jax.jit(gcn_forward)(x, edge_index, params))
        ref = _reference_forward(x, edge_index, params)
        assert out.shape == (num_nodes, classes)
        # bf16 operands (f32 accumulate) vs. full-f32 reference.
        assert jnp.allclose(out, ref, atol=6e-2, rtol=6e-2), (
            float(jnp.max(jnp.abs(out - ref))))

    # Demo size: takes the fused single-kernel fast path.
    _run_case(num_nodes=16, num_edges=32, f_in=16, hidden=32, classes=8, case=0)
    # Larger graph: exercises the tiled streaming path (512 tiles, resident H).
    _run_case(num_nodes=1500, num_edges=6000, f_in=16, hidden=32, classes=8,
              case=1)
    print("KERNEL_OK")
</pallas_src>

<mosaic_0001>
module attributes {stable_mosaic.version = 11 : i64} {
  func.func private @main(%arg0: i32) attributes {dimension_semantics = [#tpu.dimension_semantics<core_parallel>], iteration_bounds = array<i64: 2>, tpu.core_type = #tpu.core_type<sc_scalar_subcore>, window_params = []} {
    return
  }
}

module attributes {stable_mosaic.version = 11 : i64} {
  func.func private @main(%arg0: i32) attributes {dimension_semantics = [#tpu.dimension_semantics<core_parallel>], iteration_bounds = array<i64: 2>, tpu.core_type = #tpu.core_type<sc_scalar_subcore>, window_params = []} {
    return
  }
}

module attributes {stable_mosaic.version = 11 : i64} {
  func.func @_fused_gcn_kernel(%arg0: memref<128x128xbf16, #tpu.memory_space<vmem>>, %arg1: memref<128x1xf32, #tpu.memory_space<vmem>>, %arg2: memref<128x128xbf16, #tpu.memory_space<vmem>>, %arg3: memref<128x128xbf16, #tpu.memory_space<vmem>>, %arg4: memref<1x128xf32, #tpu.memory_space<vmem>>, %arg5: memref<128x128xbf16, #tpu.memory_space<vmem>>, %arg6: memref<1x128xf32, #tpu.memory_space<vmem>>, %arg7: memref<128x128xbf16, #tpu.memory_space<vmem>>, %arg8: memref<1x128xf32, #tpu.memory_space<vmem>>, %arg9: memref<128x128xf32, #tpu.memory_space<vmem>>) attributes {dimension_semantics = [], scalar_prefetch = 0 : i64, scratch_operands = 0 : i64, tpu.core_type = #tpu.core_type<tc>} {
    %c0 = arith.constant 0 : index
    %c0_0 = arith.constant 0 : index
    %0 = vector.load %arg0[%c0, %c0_0] : memref<128x128xbf16, #tpu.memory_space<vmem>>, vector<128x128xbf16>
    %c0_1 = arith.constant 0 : index
    %c0_2 = arith.constant 0 : index
    %1 = vector.load %arg1[%c0_1, %c0_2] : memref<128x1xf32, #tpu.memory_space<vmem>>, vector<128x1xf32>
    %c0_3 = arith.constant 0 : index
    %c0_4 = arith.constant 0 : index
    %2 = vector.load %arg2[%c0_3, %c0_4] : memref<128x128xbf16, #tpu.memory_space<vmem>>, vector<128x128xbf16>
    %c0_5 = arith.constant 0 : index
    %c0_6 = arith.constant 0 : index
    %3 = vector.load %arg3[%c0_5, %c0_6] : memref<128x128xbf16, #tpu.memory_space<vmem>>, vector<128x128xbf16>
    %cst = arith.constant dense<0.000000e+00> : vector<128x128xf32>
    %4 = tpu.matmul %2, %3, %cst {dimension_numbers = #tpu.dot_dimension_numbers<[1], [0], [0], [1], [0, 0, 1, 1], [], []>} : vector<128x128xbf16>, vector<128x128xbf16>, vector<128x128xf32> -> vector<128x128xf32>
    %5 = vector.broadcast %1 : vector<128x1xf32> to vector<128x128xf32>
    %6 = arith.mulf %5, %4 : vector<128x128xf32>
    %7 = arith.truncf %6 : vector<128x128xf32> to vector<128x128xbf16>
    %cst_7 = arith.constant dense<0.000000e+00> : vector<128x128xf32>
    %8 = tpu.matmul %0, %7, %cst_7 {dimension_numbers = #tpu.dot_dimension_numbers<[1], [0], [0], [1], [0, 0, 1, 1], [], []>} : vector<128x128xbf16>, vector<128x128xbf16>, vector<128x128xf32> -> vector<128x128xf32>
    %9 = vector.broadcast %1 : vector<128x1xf32> to vector<128x128xf32>
    %10 = arith.mulf %9, %8 : vector<128x128xf32>
    %c0_8 = arith.constant 0 : index
    %c0_9 = arith.constant 0 : index
    %11 = vector.load %arg4[%c0_8, %c0_9] : memref<1x128xf32, #tpu.memory_space<vmem>>, vector<1x128xf32>
    %12 = vector.broadcast %11 : vector<1x128xf32> to vector<128x128xf32>
    %13 = arith.addf %10, %12 : vector<128x128xf32>
    %cst_10 = arith.constant 0.000000e+00 : f32
    %14 = vector.broadcast %cst_10 : f32 to vector<128x128xf32>
    %15 = arith.maximumf %13, %14 : vector<128x128xf32>
    %16 = arith.truncf %15 : vector<128x128xf32> to vector<128x128xbf16>
    %c0_11 = arith.constant 0 : index
    %c0_12 = arith.constant 0 : index
    %17 = vector.load %arg5[%c0_11, %c0_12] : memref<128x128xbf16, #tpu.memory_space<vmem>>, vector<128x128xbf16>
    %cst_13 = arith.constant dense<0.000000e+00> : vector<128x128xf32>
    %18 = tpu.matmul %16, %17, %cst_13 {dimension_numbers = #tpu.dot_dimension_numbers<[1], [0], [0], [1], [0, 0, 1, 1], [], []>} : vector<128x128xbf16>, vector<128x128xbf16>, vector<128x128xf32> -> vector<128x128xf32>
    %19 = vector.broadcast %1 : vector<128x1xf32> to vector<128x128xf32>
    %20 = arith.mulf %19, %18 : vector<128x128xf32>
    %21 = arith.truncf %20 : vector<128x128xf32> to vector<128x128xbf16>
    %cst_14 = arith.constant dense<0.000000e+00> : vector<128x128xf32>
    %22 = tpu.matmul %0, %21, %cst_14 {dimension_numbers = #tpu.dot_dimension_numbers<[1], [0], [0], [1], [0, 0, 1, 1], [], []>} : vector<128x128xbf16>, vector<128x128xbf16>, vector<128x128xf32> -> vector<128x128xf32>
    %23 = vector.broadcast %1 : vector<128x1xf32> to vector<128x128xf32>
    %24 = arith.mulf %23, %22 : vector<128x128xf32>
    %c0_15 = arith.constant 0 : index
    %c0_16 = arith.constant 0 : index
    %25 = vector.load %arg6[%c0_15, %c0_16] : memref<1x128xf32, #tpu.memory_space<vmem>>, vector<1x128xf32>
    %26 = vector.broadcast %25 : vector<1x128xf32> to vector<128x128xf32>
    %27 = arith.addf %24, %26 : vector<128x128xf32>
    %cst_17 = arith.constant 0.000000e+00 : f32
    %28 = vector.broadcast %cst_17 : f32 to vector<128x128xf32>
    %29 = arith.maximumf %27, %28 : vector<128x128xf32>
    %30 = arith.truncf %29 : vector<128x128xf32> to vector<128x128xbf16>
    %c0_18 = arith.constant 0 : index
    %c0_19 = arith.constant 0 : index
    %31 = vector.load %arg7[%c0_18, %c0_19] : memref<128x128xbf16, #tpu.memory_space<vmem>>, vector<128x128xbf16>
    %cst_20 = arith.constant dense<0.000000e+00> : vector<128x128xf32>
    %32 = tpu.matmul %30, %31, %cst_20 {dimension_numbers = #tpu.dot_dimension_numbers<[1], [0], [0], [1], [0, 0, 1, 1], [], []>} : vector<128x128xbf16>, vector<128x128xbf16>, vector<128x128xf32> -> vector<128x128xf32>
    %33 = vector.broadcast %1 : vector<128x1xf32> to vector<128x128xf32>
    %34 = arith.mulf %33, %32 : vector<128x128xf32>
    %35 = arith.truncf %34 : vector<128x128xf32> to vector<128x128xbf16>
    %cst_21 = arith.constant dense<0.000000e+00> : vector<128x128xf32>
    %36 = tpu.matmul %0, %35, %cst_21 {dimension_numbers = #tpu.dot_dimension_numbers<[1], [0], [0], [1], [0, 0, 1, 1], [], []>} : vector<128x128xbf16>, vector<128x128xbf16>, vector<128x128xf32> -> vector<128x128xf32>
    %37 = vector.broadcast %1 : vector<128x1xf32> to vector<128x128xf32>
    %38 = arith.mulf %37, %36 : vector<128x128xf32>
    %c0_22 = arith.constant 0 : index
    %c0_23 = arith.constant 0 : index
    %39 = vector.load %arg8[%c0_22, %c0_23] : memref<1x128xf32, #tpu.memory_space<vmem>>, vector<1x128xf32>
    %40 = vector.broadcast %39 : vector<1x128xf32> to vector<128x128xf32>
    %41 = arith.addf %38, %40 : vector<128x128xf32>
    %c0_24 = arith.constant 0 : index
    %c0_25 = arith.constant 0 : index
    %42 = vector.load %arg9[%c0_24, %c0_25] : memref<128x128xf32, #tpu.memory_space<vmem>>, vector<128x128xf32>
    tpu.vector_store %arg9[%c0_24, %c0_25], %41 {strides = array<i32>} : memref<128x128xf32, #tpu.memory_space<vmem>>, vector<128x128xf32>,
    return
  }
}

</mosaic_0001>

<bundles_post_ra>
// kernel: gcn_forward.1
= control target key start
LH: loop header
LB: loop body
LE: loop exit
PB: predicated region body
PF: predicated region fallthrough
CT: control target
= control target key end

     0   :  { %v1662_v1 = vmov 0   ;;  %s2163_s3 = inlined_call_operand.vmem [shape: bf16[128,128], index: 3, kind: input, shape index: {}]   ;;  %s2164_s2 = inlined_call_operand.vmem [shape: bf16[128,128], index: 2, kind: input, shape index: {}]   ;;  %s2165_s1 = inlined_call_operand.vmem [shape: f32[128,1], index: 1, kind: input, shape index: {}]   ;;  %s2166_s0 = inlined_call_operand.vmem [shape: bf16[128,128], index: 0, kind: input, shape index: {}]   ;;  %s2167_s5 = inlined_call_operand.vmem [shape: bf16[128,128], index: 5, kind: input, shape index: {}]   ;;  %s2168_s4 = inlined_call_operand.vmem [shape: f32[1,128], index: 4, kind: input, shape index: {}]   ;;  %s2169_s7 = inlined_call_operand.vmem [shape: bf16[128,128], index: 7, kind: input, shape index: {}]   ;;  %s2170_s6 = inlined_call_operand.vmem [shape: f32[1,128], index: 6, kind: input, shape index: {}]   ;;  %s2171_s8 = inlined_call_operand.vmem [shape: f32[1,128], index: 8, kind: input, shape index: {}]   ;;  %s2172_s9 = inlined_call_operand.vmem [shape: f32[128,128], index: 9, kind: output, shape index: {}]  }
   0x1   :  { %v1622_v0 = vld [vmem:[%s2163_s3 + $0x38] sm:$0xff]   ;;  %1620 = vset.pattern.permute.xlu0 %v1662_v1  ;;  %1621 = vset.pattern.permute.xlu1 %v1662_v1  ;;  %v1623_v2 = vld [vmem:[%s2163_s3 + $0x30] sm:$0xff]   ;;  %v1624_v3 = vld [vmem:[%s2163_s3 + $0x28] sm:$0xff]  }
   0x2   :  { %1427 = vmatprep.subr.bf16.mxu0 %v1622_v0  ;;  %v1625_v4 = vld [vmem:[%s2163_s3 + $0x20] sm:$0xff]   ;;  %v1626_v6 = vld [vmem:[%s2163_s3 + $0x18] sm:$0xff]   ;;  %v1627_v7 = vld [vmem:[%s2163_s3 + $0x10] sm:$0xff]  }
   0x3   :  { %1428 = vmatpush3.bf16.msra.mxu0 %v1622_v0  ;;  %v1630_v5 = vld [vmem:[%s2164_s2] sm:$0xff]   ;;  %v63_v8 = vld [vmem:[%s2165_s1 + $0x70] sm:$0xff]  ;;  %v64_v10 = vld [vmem:[%s2165_s1 + $0x78] sm:$0xff] }
   0x4   :  { %1429 = vmatprep.subr.bf16.mxu0 %v1623_v2  ;;  %1443 = vmatprep.mubr.bf16.mxu0 %v1630_v5  ;;  %v61_v9 = vld [vmem:[%s2165_s1 + $0x60] sm:$0xff]  ;;  %v62_v11 = vld [vmem:[%s2165_s1 + $0x68] sm:$0xff]  ;;  %v59_v13 = vld [vmem:[%s2165_s1 + $0x50] sm:$0xff] }
   0x5   :  { %362 = vperm.xlu0 %1620, %v63_v8   ;;  %352 = vperm.xlu1 %1621, %v61_v9   ;;  %v1628_v12 = vld [vmem:[%s2163_s3 + $0x8] sm:$0xff]   ;;  %v60_v14 = vld [vmem:[%s2165_s1 + $0x58] sm:$0xff]  ;;  %v1629_v15 = vld [vmem:[%s2163_s3] sm:$0xff]  }
   0x6   :  { %v57_v16 = vld [vmem:[%s2165_s1 + $0x40] sm:$0xff]  ;;  %v58_v17 = vld [vmem:[%s2165_s1 + $0x48] sm:$0xff]  ;;  %v55_v19 = vld [vmem:[%s2165_s1 + $0x30] sm:$0xff] }
   0x7   :  { %1430 = vmatpush3.bf16.msra.mxu0 %v1623_v2  ;;  %v1631_v18 = vld [vmem:[%s2164_s2 + $0x8] sm:$0xff]   ;;  %v56_v20 = vld [vmem:[%s2165_s1 + $0x38] sm:$0xff]  ;;  %v1632_v21 = vld [vmem:[%s2164_s2 + $0x10] sm:$0xff]  }
   0x8   :  { %1431 = vmatprep.subr.bf16.mxu0 %v1624_v3  ;;  %v53_v22 = vld [vmem:[%s2165_s1 + $0x20] sm:$0xff]  ;;  %v54_v23 = vld [vmem:[%s2165_s1 + $0x28] sm:$0xff]  ;;  %v1633_v24 = vld [vmem:[%s2164_s2 + $0x18] sm:$0xff]  }
   0x9   :  { %367 = vperm.xlu0 %1620, %v64_v10   ;;  %357 = vperm.xlu1 %1621, %v62_v11   ;;  %v51_v25 = vld [vmem:[%s2165_s1 + $0x10] sm:$0xff]  ;;  %v52_v26 = vld [vmem:[%s2165_s1 + $0x18] sm:$0xff]  ;;  %v1634_v27 = vld [vmem:[%s2164_s2 + $0x20] sm:$0xff]  }
   0xa   :  { %v49_v28 = vld [vmem:[%s2165_s1] sm:$0xff]  ;;  %v50_v29 = vld [vmem:[%s2165_s1 + $0x8] sm:$0xff]  ;;  %v1636_v31 = vld [vmem:[%s2164_s2 + $0x30] sm:$0xff]  }
   0xb   :  { %1432 = vmatpush3.bf16.msra.mxu0 %v1624_v3  ;;  %v1635_v30 = vld [vmem:[%s2164_s2 + $0x28] sm:$0xff]   ;;  %v1637_v32 = vld [vmem:[%s2164_s2 + $0x38] sm:$0xff]   ;;  %v1812_v33 = vld [vmem:[%s2166_s0] sm:$0xff]  }
   0xc   :  { %1433 = vmatprep.subr.bf16.mxu0 %v1625_v4  ;;  %1475 = vmatprep.mubr.bf16.mxu1 %v1812_v33  ;;  %v1646_v34 = vld [vmem:[%s2167_s5 + $0x38] sm:$0xff]   ;;  %v1647_v35 = vld [vmem:[%s2167_s5 + $0x30] sm:$0xff]   ;;  %v1648_v36 = vld [vmem:[%s2167_s5 + $0x28] sm:$0xff]  }
   0xd   :  { %342 = vperm.xlu0 %1620, %v59_v13   ;;  %347 = vperm.xlu1 %1621, %v60_v14   ;;  %v1649_v37 = vld [vmem:[%s2167_s5 + $0x20] sm:$0xff]  }
   0xf   :  { %1434 = vmatpush3.bf16.msra.mxu0 %v1625_v4 }
  0x10   :  { %1435 = vmatprep.subr.bf16.mxu0 %v1626_v6 }
  0x11   :  { %332 = vperm.xlu0 %1620, %v57_v16   ;;  %337 = vperm.xlu1 %1621, %v58_v17  }
  0x13   :  { %1436 = vmatpush3.bf16.msra.mxu0 %v1626_v6 }
  0x14   :  { %1437 = vmatprep.subr.bf16.mxu0 %v1627_v7 }
  0x15   :  { %322 = vperm.xlu0 %1620, %v55_v19   ;;  %327 = vperm.xlu1 %1621, %v56_v20  }
  0x17   :  { %1438 = vmatpush3.bf16.msra.mxu0 %v1627_v7 }
  0x18   :  { %1439 = vmatprep.subr.bf16.mxu0 %v1628_v12 }
  0x19   :  { %312 = vperm.xlu0 %1620, %v53_v22   ;;  %317 = vperm.xlu1 %1621, %v54_v23  }
  0x1b   :  { %1440 = vmatpush3.bf16.msra.mxu0 %v1628_v12 }
  0x1c   :  { %1441 = vmatprep.subr.bf16.mxu0 %v1629_v15 }
  0x1d   :  { %302 = vperm.xlu0 %1620, %v51_v25   ;;  %307 = vperm.xlu1 %1621, %v52_v26  }
  0x1f   :  { %1442 = vmatpush3.bf16.msra.mxu0 %v1629_v15 }
  0x20   :  { %1491 = vmatprep.subr.bf16.mxu0 %v1646_v34 }
  0x21   :  { %292 = vperm.xlu0 %1620, %v49_v28   ;;  %297 = vperm.xlu1 %1621, %v50_v29  }
  0x22   :  { %1444 = vmatmul.mubr.bf16.vlgmr.msra.gmra.mxu0 %v1631_v18 }
  0x23   :  { %1447 = vmatprep.mubr.bf16.mxu0 %v1632_v21  ;;  %1492 = vmatpush3.bf16.msra.mxu0 %v1646_v34  ;;  %v1898_v34 = vld [vmem:[%s2166_s0 + $0x20] sm:$0xff]  }
  0x24   :  { %1493 = vmatprep.subr.bf16.mxu0 %v1647_v35 }
  0x27   :  { %1494 = vmatpush3.bf16.msra.mxu0 %v1647_v35  ;;  %v1905_v35 = vld [vmem:[%s2166_s0 + $0x28] sm:$0xff]  }
  0x28   :  { %1495 = vmatprep.subr.bf16.mxu0 %v1648_v36 }
  0x2a   :  { %1448 = vmatmul.mubr.bf16.gmra.mxu0 %v1633_v24 }
  0x2b   :  { %1451 = vmatprep.mubr.bf16.mxu0 %v1634_v27  ;;  %1496 = vmatpush3.bf16.msra.mxu0 %v1648_v36  ;;  %v1910_v36 = vld [vmem:[%s2166_s0 + $0x30] sm:$0xff]  }
  0x2c   :  { %1497 = vmatprep.subr.bf16.mxu0 %v1649_v37 }
  0x2f   :  { %1498 = vmatpush3.bf16.msra.mxu0 %v1649_v37  ;;  %v1917_v37 = vld [vmem:[%s2166_s0 + $0x38] sm:$0xff]  }
  0x32   :  { %1452 = vmatmul.mubr.bf16.gmra.mxu0 %v1635_v30  ;;  %v1881_v30 = vld [vmem:[%s2166_s0 + $0x8] sm:$0xff]  }
  0x33   :  { %1455 = vmatprep.mubr.bf16.mxu0 %v1636_v31  ;;  %v1886_v31 = vld [vmem:[%s2166_s0 + $0x10] sm:$0xff]  }
  0x3a   :  { %1456 = vmatmul.mubr.bf16.gmra.mxu0 %v1637_v32  ;;  %v1893_v32 = vld [vmem:[%s2166_s0 + $0x18] sm:$0xff]  }
  0x80   :  { %v1829_v42 = vpop.permute.xlu1 %352  ;;  %v1831_v44 = vpop.permute.xlu0 %362 }
  0x84   :  { %v1833_v47 = vpop.permute.xlu1 %357  ;;  %v1835_v49 = vpop.permute.xlu0 %367 }
  0x88   :  { %v1837_v52 = vpop.permute.xlu1 %347  ;;  %v1839_v54 = vpop.permute.xlu0 %342 }
  0x8c   :  { %v1841_v57 = vpop.permute.xlu1 %337  ;;  %v1843_v59 = vpop.permute.xlu0 %332 }
  0x90   :  { %v1849_v3 = vpop.permute.xlu1 %327  ;;  %v1852_v6 = vpop.permute.xlu0 %322 }
  0x94   :  { %v1856_v10 = vpop.permute.xlu1 %317  ;;  %v1859_v12 = vpop.permute.xlu0 %312 }
  0x98   :  { %v1863_v16 = vpop.permute.xlu1 %307  ;;  %v1866_v19 = vpop.permute.xlu0 %302 }
  0x9c   :  { %v1870_v23 = vpop.permute.xlu1 %297  ;;  %v1873_v25 = vpop.permute.xlu0 %292 }
  0xe2   :  { %v1445_v38 = vpop.f32.mrf.mxu0 }
  0xe3   :  { %v372_v24 = vmul.f32 %v1445_v38, %v1866_v19  ;;  %v1650_v38 = vld [vmem:[%s2167_s5 + $0x18] sm:$0xff]  }
  0xe4   :  { %v1827_v39 = vpop.f32.mrf.mxu0  ;;  %1499 = vmatprep.subr.bf16.mxu0 %v1650_v38 }
  0xe5   :  { %v370_v28 = vmul.f32 %v1873_v25, %v1827_v39  ;;  %1500 = vmatpush3.bf16.msra.mxu0 %v1650_v38  ;;  %v1651_v39 = vld [vmem:[%s2167_s5 + $0x10] sm:$0xff]  }
  0xe6   :  { %v1446_v40 = vpop.f32.mrf.mxu0  ;;  %1501 = vmatprep.subr.bf16.mxu0 %v1651_v39 }
  0xe7   :  { %v373_v21 = vmul.f32 %v1446_v40, %v1863_v16  ;;  %v1652_v40 = vld [vmem:[%s2167_s5 + $0x8] sm:$0xff]  }
  0xe8   :  { %v230_v41 = vpop.f32.mrf.mxu0 }
  0xe9   :  { %v387_v26 = vpack.c.bf16 %v373_v21, %v372_v24  ;;  %v371_v27 = vmul.f32 %v1870_v23, %v230_v41  ;;  %1502 = vmatpush3.bf16.msra.mxu0 %v1651_v39  ;;  %v1653_v41 = vld [vmem:[%s2167_s5] sm:$0xff]  }
  0xea   :  { %v1449_v43 = vpop.f32.mrf.mxu0  ;;  %1503 = vmatprep.subr.bf16.mxu0 %v1652_v40 }
  0xeb   :  { %v376_v15 = vmul.f32 %v1449_v43, %v1852_v6  ;;  %v386_v29 = vpack.c.bf16 %v371_v27, %v370_v28 }
  0xec   :  { %v243_v45 = vpop.f32.mrf.mxu0 }
  0xed   :  { %v374_v20 = vmul.f32 %v1859_v12, %v243_v45  ;;  %1504 = vmatpush3.bf16.msra.mxu0 %v1652_v40 }
  0xee   :  { %v1450_v46 = vpop.f32.mrf.mxu0  ;;  %1505 = vmatprep.subr.bf16.mxu0 %v1653_v41 }
  0xef   :  { %v377_v13 = vmul.f32 %v1450_v46, %v1849_v3 }
  0xf0   :  { %v246_v48 = vpop.f32.mrf.mxu0 }
  0xf1   :  { %v389_v17 = vpack.c.bf16 %v377_v13, %v376_v15  ;;  %v375_v18 = vmul.f32 %v1856_v10, %v246_v48  ;;  %1506 = vmatpush3.bf16.msra.mxu0 %v1653_v41 }
  0xf2   :  { %v1453_v50 = vpop.f32.mrf.mxu0 }
  0xf3   :  { %v380_v7 = vmul.f32 %v1453_v50, %v1839_v54  ;;  %v388_v22 = vpack.c.bf16 %v375_v18, %v374_v20 }
  0xf4   :  { %v259_v51 = vpop.f32.mrf.mxu0 }
  0xf5   :  { %v378_v11 = vmul.f32 %v1843_v59, %v259_v51  ;;  %v1938_v51 = vld [vmem:[%s2168_s4] ss:$0 sm:$0xff] }
  0xf6   :  { %v1454_v53 = vpop.f32.mrf.mxu0 }
  0xf7   :  { %v381_v4 = vmul.f32 %v1454_v53, %v1837_v52 }
  0xf8   :  { %v262_v55 = vpop.f32.mrf.mxu0 }
  0xf9   :  { %v391_v8 = vpack.c.bf16 %v381_v4, %v380_v7  ;;  %v379_v9 = vmul.f32 %v1841_v57, %v262_v55 }
  0xfa   :  { %v1457_v56 = vpop.f32.mrf.mxu0 }
  0xfb   :  { %v384_v61 = vmul.f32 %v1457_v56, %v1831_v44  ;;  %v390_v14 = vpack.c.bf16 %v379_v9, %v378_v11 }
  0xfc   :  { %v275_v58 = vpop.f32.mrf.mxu0 }
  0xfd   :  { %v382_v0 = vmul.f32 %v1829_v42, %v275_v58 }
  0xfe   :  { %v1458_v60 = vpop.f32.mrf.mxu0 }
  0xff   :  { %v385_v62 = vmul.f32 %v1458_v60, %v1835_v49 }
 0x100   :  { %v278_v63 = vpop.f32.mrf.mxu0 }
 0x101   :  { %v383_v1 = vmul.f32 %v1833_v47, %v278_v63  ;;  %v393_v2 = vpack.c.bf16 %v385_v62, %v384_v61 }
 0x103   :  { %v392_v5 = vpack.c.bf16 %v383_v1, %v382_v0  ;;  %1459 = vmatprep.subr.bf16.mxu1 %v393_v2 }
 0x104   :  { %1460 = vmatpush3.bf16.msra.mxu1 %v393_v2 }
 0x105   :  { %1461 = vmatprep.subr.bf16.mxu1 %v392_v5 }
 0x108   :  { %1462 = vmatpush3.bf16.msra.mxu1 %v392_v5 }
 0x109   :  { %1463 = vmatprep.subr.bf16.mxu1 %v391_v8 }
 0x10c   :  { %1464 = vmatpush3.bf16.msra.mxu1 %v391_v8 }
 0x10d   :  { %1465 = vmatprep.subr.bf16.mxu1 %v390_v14 }
 0x110   :  { %1466 = vmatpush3.bf16.msra.mxu1 %v390_v14 }
 0x111   :  { %1467 = vmatprep.subr.bf16.mxu1 %v389_v17 }
 0x114   :  { %1468 = vmatpush3.bf16.msra.mxu1 %v389_v17 }
 0x115   :  { %1469 = vmatprep.subr.bf16.mxu1 %v388_v22 }
 0x118   :  { %1470 = vmatpush3.bf16.msra.mxu1 %v388_v22 }
 0x119   :  { %1471 = vmatprep.subr.bf16.mxu1 %v387_v26 }
 0x11c   :  { %1472 = vmatpush3.bf16.msra.mxu1 %v387_v26 }
 0x11d   :  { %1473 = vmatprep.subr.bf16.mxu1 %v386_v29 }
 0x120   :  { %1474 = vmatpush3.bf16.msra.mxu1 %v386_v29 }
 0x123   :  { %1476 = vmatmul.mubr.bf16.vlgmr.msra.gmra.mxu1 %v1881_v30 }
 0x124   :  { %1479 = vmatprep.mubr.bf16.mxu1 %v1886_v31 }
 0x12b   :  { %1480 = vmatmul.mubr.bf16.gmra.mxu1 %v1893_v32 }
 0x12c   :  { %1483 = vmatprep.mubr.bf16.mxu1 %v1898_v34 }
 0x133   :  { %1484 = vmatmul.mubr.bf16.gmra.mxu1 %v1905_v35 }
 0x134   :  { %1487 = vmatprep.mubr.bf16.mxu1 %v1910_v36 }
 0x13b   :  { %1488 = vmatmul.mubr.bf16.gmra.mxu1 %v1917_v37 }
 0x13c   :  { %1539 = vmatprep.mubr.bf16.mxu1 %v1812_v33 }
 0x1e3   :  { %v1477_v43 = vpop.f32.mrf.mxu1 }
 0x1e4   :  { %v541_v48 = vmul.f32 %v1477_v43, %v1866_v19 }
 0x1e5   :  { %v476_v45 = vpop.f32.mrf.mxu1 }
 0x1e6   :  { %v539_v46 = vmul.f32 %v476_v45, %v1873_v25  ;;  %v564_v61 = vadd.f32 %v1938_v51, %v541_v48 }
 0x1e7   :  { %v1478_v50 = vpop.f32.mrf.mxu1 }
 0x1e8   :  { %v542_v53 = vmul.f32 %v1478_v50, %v1863_v16  ;;  %v562_v56 = vadd.f32 %v1938_v51, %v539_v46  ;;  %v580_v7 = vmax.f32 %v564_v61, 0.0 }
 0x1e9   :  { %v479_v55 = vpop.f32.mrf.mxu1 }
 0x1ea   :  { %v565_v58 = vadd.f32 %v1938_v51, %v542_v53  ;;  %v540_v60 = vmul.f32 %v479_v55, %v1870_v23  ;;  %v578_v2 = vmax.f32 %v562_v56, 0.0 }
 0x1eb   :  { %v1481_v62 = vpop.f32.mrf.mxu1 }
 0x1ec   :  { %v563_v63 = vadd.f32 %v1938_v51, %v540_v60  ;;  %v581_v0 = vmax.f32 %v565_v58, 0.0  ;;  %v545_v8 = vmul.f32 %v1481_v62, %v1852_v6 }
 0x1ed   :  { %v492_v1 = vpop.f32.mrf.mxu1 }
 0x1ee   :  { %v579_v4 = vmax.f32 %v563_v63, 0.0  ;;  %v543_v5 = vmul.f32 %v492_v1, %v1859_v12  ;;  %v595_v14 = vpack.c.bf16 %v581_v0, %v580_v7  ;;  %v568_v21 = vadd.f32 %v1938_v51, %v545_v8 }
 0x1ef   :  { %v1482_v9 = vpop.f32.mrf.mxu1 }
 0x1f0   :  { %v546_v11 = vmul.f32 %v1482_v9, %v1849_v3  ;;  %v594_v13 = vpack.c.bf16 %v579_v4, %v578_v2  ;;  %v566_v17 = vadd.f32 %v1938_v51, %v543_v5  ;;  %v584_v39 = vmax.f32 %v568_v21, 0.0 }
 0x1f1   :  { %v495_v15 = vpop.f32.mrf.mxu1 }
 0x1f2   :  { %v569_v18 = vadd.f32 %v1938_v51, %v546_v11  ;;  %v544_v20 = vmul.f32 %v495_v15, %v1856_v10  ;;  %1507 = vmatprep.mubr.bf16.mxu0 %v594_v13  ;;  %v582_v28 = vmax.f32 %v566_v17, 0.0 }
 0x1f3   :  { %v1485_v22 = vpop.f32.mrf.mxu1  ;;  %1508 = vmatmul.mubr.bf16.vlgmr.msra.gmra.mxu0 %v595_v14 }
 0x1f4   :  { %v567_v24 = vadd.f32 %v1938_v51, %v544_v20  ;;  %v585_v26 = vmax.f32 %v569_v18, 0.0  ;;  %v549_v40 = vmul.f32 %v1485_v22, %v1839_v54 }
 0x1f5   :  { %v508_v27 = vpop.f32.mrf.mxu1 }
 0x1f6   :  { %v583_v29 = vmax.f32 %v567_v24, 0.0  ;;  %v547_v38 = vmul.f32 %v508_v27, %v1843_v59  ;;  %v597_v48 = vpack.c.bf16 %v585_v26, %v584_v39  ;;  %v572_v56 = vadd.f32 %v1938_v51, %v549_v40 }
 0x1f7   :  { %v1486_v41 = vpop.f32.mrf.mxu1 }
 0x1f8   :  { %v550_v43 = vmul.f32 %v1486_v41, %v1837_v52  ;;  %v596_v45 = vpack.c.bf16 %v583_v29, %v582_v28  ;;  %v570_v50 = vadd.f32 %v1938_v51, %v547_v38  ;;  %v588_v2 = vmax.f32 %v572_v56, 0.0  ;;  %v1654_v28 = vld [vmem:[%s2169_s7 + $0x38] sm:$0xff]   ;;  %v1655_v29 = vld [vmem:[%s2169_s7 + $0x30] sm:$0xff]   ;;  %v1657_v38 = vld [vmem:[%s2169_s7 + $0x20] sm:$0xff]  }
 0x1f9   :  { %v511_v46 = vpop.f32.mrf.mxu1  ;;  %1555 = vmatprep.subr.bf16.mxu0 %v1654_v28 }
 0x1fa   :  { %v573_v53 = vadd.f32 %v1938_v51, %v550_v43  ;;  %v548_v55 = vmul.f32 %v511_v46, %v1841_v57  ;;  %1511 = vmatprep.mubr.bf16.mxu0 %v596_v45  ;;  %v586_v63 = vmax.f32 %v570_v50, 0.0  ;;  %1556 = vmatpush3.bf16.msra.mxu0 %v1654_v28 }
 0x1fb   :  { %v1489_v58 = vpop.f32.mrf.mxu1  ;;  %1512 = vmatmul.mubr.bf16.gmra.mxu0 %v597_v48  ;;  %1557 = vmatprep.subr.bf16.mxu0 %v1655_v29 }
 0x1fc   :  { %v571_v60 = vadd.f32 %v1938_v51, %v548_v55  ;;  %v589_v61 = vmax.f32 %v573_v53, 0.0  ;;  %v553_v4 = vmul.f32 %v1489_v58, %v1831_v44 }
 0x1fd   :  { %v524_v62 = vpop.f32.mrf.mxu1 }
 0x1fe   :  { %v587_v0 = vmax.f32 %v571_v60, 0.0  ;;  %v551_v1 = vmul.f32 %v524_v62, %v1829_v42  ;;  %v599_v11 = vpack.c.bf16 %v589_v61, %v588_v2  ;;  %v576_v17 = vadd.f32 %v1938_v51, %v553_v4  ;;  %1558 = vmatpush3.bf16.msra.mxu0 %v1655_v29 }
 0x1ff   :  { %v1490_v5 = vpop.f32.mrf.mxu1 }
 0x200   :  { %v554_v7 = vmul.f32 %v1490_v5, %v1835_v49  ;;  %v598_v8 = vpack.c.bf16 %v587_v0, %v586_v63  ;;  %v574_v13 = vadd.f32 %v1938_v51, %v551_v1  ;;  %v592_v24 = vmax.f32 %v576_v17, 0.0 }
 0x201   :  { %v527_v9 = vpop.f32.mrf.mxu1 }
 0x202   :  { %v577_v14 = vadd.f32 %v1938_v51, %v554_v7  ;;  %v552_v15 = vmul.f32 %v527_v9, %v1833_v47  ;;  %1515 = vmatprep.mubr.bf16.mxu0 %v598_v8  ;;  %v590_v21 = vmax.f32 %v574_v13, 0.0 }
 0x203   :  { %1516 = vmatmul.mubr.bf16.gmra.mxu0 %v599_v11 }
 0x204   :  { %v575_v18 = vadd.f32 %v1938_v51, %v552_v15  ;;  %v593_v20 = vmax.f32 %v577_v14, 0.0  ;;  %v1656_v51 = vld [vmem:[%s2169_s7 + $0x28] sm:$0xff]  }
 0x205   :  { %1559 = vmatprep.subr.bf16.mxu0 %v1656_v51 }
 0x206   :  { %v591_v22 = vmax.f32 %v575_v18, 0.0  ;;  %v601_v27 = vpack.c.bf16 %v593_v20, %v592_v24  ;;  %1560 = vmatpush3.bf16.msra.mxu0 %v1656_v51 }
 0x207   :  { %1561 = vmatprep.subr.bf16.mxu0 %v1657_v38 }
 0x208   :  { %v600_v26 = vpack.c.bf16 %v591_v22, %v590_v21 }
 0x20a   :  { %1519 = vmatprep.mubr.bf16.mxu0 %v600_v26  ;;  %1562 = vmatpush3.bf16.msra.mxu0 %v1657_v38 }
 0x20b   :  { %1520 = vmatmul.mubr.bf16.gmra.mxu0 %v601_v27 }
 0x2b3   :  { %v1509_v39 = vpop.f32.mrf.mxu0 }
 0x2b4   :  { %v765_v27 = vmul.f32 %v1509_v39, %v1866_v19  ;;  %v1658_v39 = vld [vmem:[%s2169_s7 + $0x18] sm:$0xff]  }
 0x2b5   :  { %v700_v40 = vpop.f32.mrf.mxu0  ;;  %1563 = vmatprep.subr.bf16.mxu0 %v1658_v39 }
 0x2b6   :  { %v763_v51 = vmul.f32 %v700_v40, %v1873_v25  ;;  %1564 = vmatpush3.bf16.msra.mxu0 %v1658_v39  ;;  %v1659_v40 = vld [vmem:[%s2169_s7 + $0x10] sm:$0xff]  }
 0x2b7   :  { %v1510_v41 = vpop.f32.mrf.mxu0  ;;  %1565 = vmatprep.subr.bf16.mxu0 %v1659_v40 }
 0x2b8   :  { %v766_v24 = vmul.f32 %v1510_v41, %v1863_v16  ;;  %v1660_v41 = vld [vmem:[%s2169_s7 + $0x8] sm:$0xff]  }
 0x2b9   :  { %v703_v43 = vpop.f32.mrf.mxu0 }
 0x2ba   :  { %v780_v28 = vpack.c.bf16 %v766_v24, %v765_v27  ;;  %v764_v29 = vmul.f32 %v703_v43, %v1870_v23  ;;  %1566 = vmatpush3.bf16.msra.mxu0 %v1659_v40 }
 0x2bb   :  { %v1513_v45 = vpop.f32.mrf.mxu0  ;;  %1567 = vmatprep.subr.bf16.mxu0 %v1660_v41 }
 0x2bc   :  { %v769_v18 = vmul.f32 %v1513_v45, %v1852_v6  ;;  %v779_v38 = vpack.c.bf16 %v764_v29, %v763_v51 }
 0x2bd   :  { %v716_v46 = vpop.f32.mrf.mxu0 }
 0x2be   :  { %v767_v22 = vmul.f32 %v716_v46, %v1859_v12  ;;  %1568 = vmatpush3.bf16.msra.mxu0 %v1660_v41 }
 0x2bf   :  { %v1514_v48 = vpop.f32.mrf.mxu0 }
 0x2c0   :  { %v770_v15 = vmul.f32 %v1514_v48, %v1849_v3 }
 0x2c1   :  { %v719_v50 = vpop.f32.mrf.mxu0 }
 0x2c2   :  { %v782_v20 = vpack.c.bf16 %v770_v15, %v769_v18  ;;  %v768_v21 = vmul.f32 %v719_v50, %v1856_v10 }
 0x2c3   :  { %v1517_v53 = vpop.f32.mrf.mxu0 }
 0x2c4   :  { %v773_v9 = vmul.f32 %v1517_v53, %v1839_v54  ;;  %v781_v26 = vpack.c.bf16 %v768_v21, %v767_v22  ;;  %v2023_v53 = vld [vmem:[%s2170_s6] ss:$0 sm:$0xff] }
 0x2c5   :  { %v732_v55 = vpop.f32.mrf.mxu0 }
 0x2c6   :  { %v771_v14 = vmul.f32 %v732_v55, %v1843_v59 }
 0x2c7   :  { %v1518_v56 = vpop.f32.mrf.mxu0 }
 0x2c8   :  { %v774_v7 = vmul.f32 %v1518_v56, %v1837_v52 }
 0x2c9   :  { %v735_v58 = vpop.f32.mrf.mxu0 }
 0x2ca   :  { %v784_v11 = vpack.c.bf16 %v774_v7, %v773_v9  ;;  %v772_v13 = vmul.f32 %v735_v58, %v1841_v57 }
 0x2cb   :  { %v1521_v60 = vpop.f32.mrf.mxu0 }
 0x2cc   :  { %v777_v63 = vmul.f32 %v1521_v60, %v1831_v44  ;;  %v783_v17 = vpack.c.bf16 %v772_v13, %v771_v14 }
 0x2cd   :  { %v748_v61 = vpop.f32.mrf.mxu0 }
 0x2ce   :  { %v775_v2 = vmul.f32 %v748_v61, %v1829_v42 }
 0x2cf   :  { %v1522_v62 = vpop.f32.mrf.mxu0 }
 0x2d0   :  { %v778_v0 = vmul.f32 %v1522_v62, %v1835_v49 }
 0x2d1   :  { %v751_v1 = vpop.f32.mrf.mxu0 }
 0x2d2   :  { %v786_v4 = vpack.c.bf16 %v778_v0, %v777_v63  ;;  %v776_v5 = vmul.f32 %v751_v1, %v1833_v47 }
 0x2d4   :  { %v785_v8 = vpack.c.bf16 %v776_v5, %v775_v2  ;;  %1523 = vmatprep.subr.bf16.mxu1 %v786_v4 }
 0x2d5   :  { %1524 = vmatpush3.bf16.msra.mxu1 %v786_v4 }
 0x2d6   :  { %1525 = vmatprep.subr.bf16.mxu1 %v785_v8 }
 0x2d9   :  { %1526 = vmatpush3.bf16.msra.mxu1 %v785_v8 }
 0x2da   :  { %1527 = vmatprep.subr.bf16.mxu1 %v784_v11 }
 0x2dd   :  { %1528 = vmatpush3.bf16.msra.mxu1 %v784_v11 }
 0x2de   :  { %1529 = vmatprep.subr.bf16.mxu1 %v783_v17 }
 0x2e1   :  { %1530 = vmatpush3.bf16.msra.mxu1 %v783_v17 }
 0x2e2   :  { %1531 = vmatprep.subr.bf16.mxu1 %v782_v20 }
 0x2e5   :  { %1532 = vmatpush3.bf16.msra.mxu1 %v782_v20 }
 0x2e6   :  { %1533 = vmatprep.subr.bf16.mxu1 %v781_v26 }
 0x2e9   :  { %1534 = vmatpush3.bf16.msra.mxu1 %v781_v26 }
 0x2ea   :  { %1535 = vmatprep.subr.bf16.mxu1 %v780_v28 }
 0x2ed   :  { %1536 = vmatpush3.bf16.msra.mxu1 %v780_v28 }
 0x2ee   :  { %1537 = vmatprep.subr.bf16.mxu1 %v779_v38 }
 0x2f1   :  { %1538 = vmatpush3.bf16.msra.mxu1 %v779_v38 }
 0x2f4   :  { %1540 = vmatmul.mubr.bf16.vlgmr.msra.gmra.mxu1 %v1881_v30 }
 0x2f5   :  { %1543 = vmatprep.mubr.bf16.mxu1 %v1886_v31 }
 0x2fc   :  { %1544 = vmatmul.mubr.bf16.gmra.mxu1 %v1893_v32 }
 0x2fd   :  { %1547 = vmatprep.mubr.bf16.mxu1 %v1898_v34 }
 0x304   :  { %1548 = vmatmul.mubr.bf16.gmra.mxu1 %v1905_v35 }
 0x305   :  { %1551 = vmatprep.mubr.bf16.mxu1 %v1910_v36 }
 0x30c   :  { %1552 = vmatmul.mubr.bf16.gmra.mxu1 %v1917_v37 }
 0x30d   :  { %1603 = vmatprep.mubr.bf16.mxu1 %v1812_v33  ;;  %v1661_v33 = vld [vmem:[%s2169_s7] sm:$0xff]  }
 0x30e   :  { %1569 = vmatprep.subr.bf16.mxu0 %v1661_v33 }
 0x30f   :  { %1570 = vmatpush3.bf16.msra.mxu0 %v1661_v33 }
 0x3b4   :  { %v1541_v43 = vpop.f32.mrf.mxu1 }
 0x3b5   :  { %v886_v48 = vmul.f32 %v1541_v43, %v1866_v19 }
 0x3b6   :  { %v821_v45 = vpop.f32.mrf.mxu1 }
 0x3b7   :  { %v884_v46 = vmul.f32 %v821_v45, %v1873_v25  ;;  %v909_v62 = vadd.f32 %v2023_v53, %v886_v48 }
 0x3b8   :  { %v1542_v50 = vpop.f32.mrf.mxu1 }
 0x3b9   :  { %v887_v55 = vmul.f32 %v1542_v50, %v1863_v16  ;;  %v907_v58 = vadd.f32 %v2023_v53, %v884_v46  ;;  %v925_v8 = vmax.f32 %v909_v62, 0.0 }
 0x3ba   :  { %v824_v56 = vpop.f32.mrf.mxu1 }
 0x3bb   :  { %v910_v60 = vadd.f32 %v2023_v53, %v887_v55  ;;  %v885_v61 = vmul.f32 %v824_v56, %v1870_v23  ;;  %v923_v4 = vmax.f32 %v907_v58, 0.0 }
 0x3bc   :  { %v1545_v63 = vpop.f32.mrf.mxu1 }
 0x3bd   :  { %v908_v0 = vadd.f32 %v2023_v53, %v885_v61  ;;  %v926_v1 = vmax.f32 %v910_v60, 0.0  ;;  %v890_v9 = vmul.f32 %v1545_v63, %v1852_v6 }
 0x3be   :  { %v837_v2 = vpop.f32.mrf.mxu1 }
 0x3bf   :  { %v924_v5 = vmax.f32 %v908_v0, 0.0  ;;  %v888_v7 = vmul.f32 %v837_v2, %v1859_v12  ;;  %v940_v15 = vpack.c.bf16 %v926_v1, %v925_v8  ;;  %v913_v22 = vadd.f32 %v2023_v53, %v890_v9 }
 0x3c0   :  { %v1546_v11 = vpop.f32.mrf.mxu1 }
 0x3c1   :  { %v891_v13 = vmul.f32 %v1546_v11, %v1849_v3  ;;  %v939_v14 = vpack.c.bf16 %v924_v5, %v923_v4  ;;  %v911_v18 = vadd.f32 %v2023_v53, %v888_v7  ;;  %v929_v39 = vmax.f32 %v913_v22, 0.0 }
 0x3c2   :  { %v840_v17 = vpop.f32.mrf.mxu1 }
 0x3c3   :  { %v914_v20 = vadd.f32 %v2023_v53, %v891_v13  ;;  %v889_v21 = vmul.f32 %v840_v17, %v1856_v10  ;;  %1571 = vmatprep.mubr.bf16.mxu0 %v939_v14  ;;  %v927_v29 = vmax.f32 %v911_v18, 0.0 }
 0x3c4   :  { %v1549_v24 = vpop.f32.mrf.mxu1  ;;  %1572 = vmatmul.mubr.bf16.vlgmr.msra.gmra.mxu0 %v940_v15 }
 0x3c5   :  { %v912_v26 = vadd.f32 %v2023_v53, %v889_v21  ;;  %v930_v27 = vmax.f32 %v914_v20, 0.0  ;;  %v894_v40 = vmul.f32 %v1549_v24, %v1839_v54 }
 0x3c6   :  { %v853_v28 = vpop.f32.mrf.mxu1 }
 0x3c7   :  { %v928_v51 = vmax.f32 %v912_v26, 0.0  ;;  %v892_v38 = vmul.f32 %v853_v28, %v1843_v59  ;;  %v942_v46 = vpack.c.bf16 %v930_v27, %v929_v39  ;;  %v917_v56 = vadd.f32 %v2023_v53, %v894_v40 }
 0x3c8   :  { %v1550_v41 = vpop.f32.mrf.mxu1 }
 0x3c9   :  { %v895_v33 = vmul.f32 %v1550_v41, %v1837_v52  ;;  %v941_v43 = vpack.c.bf16 %v928_v51, %v927_v29  ;;  %v915_v48 = vadd.f32 %v2023_v53, %v892_v38  ;;  %v933_v2 = vmax.f32 %v917_v56, 0.0 }
 0x3ca   :  { %v856_v45 = vpop.f32.mrf.mxu1 }
 0x3cb   :  { %v918_v50 = vadd.f32 %v2023_v53, %v895_v33  ;;  %v893_v55 = vmul.f32 %v856_v45, %v1841_v57  ;;  %1575 = vmatprep.mubr.bf16.mxu0 %v941_v43  ;;  %v931_v63 = vmax.f32 %v915_v48, 0.0 }
 0x3cc   :  { %v1553_v58 = vpop.f32.mrf.mxu1  ;;  %1576 = vmatmul.mubr.bf16.gmra.mxu0 %v942_v46 }
 0x3cd   :  { %v916_v60 = vadd.f32 %v2023_v53, %v893_v55  ;;  %v934_v61 = vmax.f32 %v918_v50, 0.0  ;;  %v898_v4 = vmul.f32 %v1553_v58, %v1831_v44 }
 0x3ce   :  { %v869_v62 = vpop.f32.mrf.mxu1 }
 0x3cf   :  { %v932_v0 = vmax.f32 %v916_v60, 0.0  ;;  %v896_v1 = vmul.f32 %v869_v62, %v1829_v42  ;;  %v944_v11 = vpack.c.bf16 %v934_v61, %v933_v2  ;;  %v921_v17 = vadd.f32 %v2023_v53, %v898_v4 }
 0x3d0   :  { %v1554_v5 = vpop.f32.mrf.mxu1 }
 0x3d1   :  { %v899_v7 = vmul.f32 %v1554_v5, %v1835_v49  ;;  %v943_v8 = vpack.c.bf16 %v932_v0, %v931_v63  ;;  %v919_v13 = vadd.f32 %v2023_v53, %v896_v1  ;;  %v937_v24 = vmax.f32 %v921_v17, 0.0 }
 0x3d2   :  { %v872_v9 = vpop.f32.mrf.mxu1 }
 0x3d3   :  { %v922_v14 = vadd.f32 %v2023_v53, %v899_v7  ;;  %v897_v15 = vmul.f32 %v872_v9, %v1833_v47  ;;  %1579 = vmatprep.mubr.bf16.mxu0 %v943_v8  ;;  %v935_v21 = vmax.f32 %v919_v13, 0.0 }
 0x3d4   :  { %1580 = vmatmul.mubr.bf16.gmra.mxu0 %v944_v11 }
 0x3d5   :  { %v920_v18 = vadd.f32 %v2023_v53, %v897_v15  ;;  %v938_v20 = vmax.f32 %v922_v14, 0.0 }
 0x3d7   :  { %v936_v22 = vmax.f32 %v920_v18, 0.0  ;;  %v946_v27 = vpack.c.bf16 %v938_v20, %v937_v24 }
 0x3d9   :  { %v945_v26 = vpack.c.bf16 %v936_v22, %v935_v21 }
 0x3db   :  { %1583 = vmatprep.mubr.bf16.mxu0 %v945_v26 }
 0x3dc   :  { %1584 = vmatmul.mubr.bf16.gmra.mxu0 %v946_v27 }
 0x484   :  { %v1573_v28 = vpop.f32.mrf.mxu0 }
 0x485   :  { %v1110_v20 = vmul.f32 %v1573_v28, %v1866_v19  ;;  %v2081_v28 = vld [vmem:[%s2171_s8] ss:$0 sm:$0xff] }
 0x486   :  { %v1045_v29 = vpop.f32.mrf.mxu0 }
 0x487   :  { %v1108_v24 = vmul.f32 %v1045_v29, %v1873_v25 }
 0x488   :  { %v1574_v51 = vpop.f32.mrf.mxu0 }
 0x489   :  { %v1111_v17 = vmul.f32 %v1574_v51, %v1863_v16 }
 0x48a   :  { %v1048_v38 = vpop.f32.mrf.mxu0 }
 0x48b   :  { %v1125_v21 = vpack.c.bf16 %v1111_v17, %v1110_v20  ;;  %v1109_v22 = vmul.f32 %v1048_v38, %v1870_v23 }
 0x48c   :  { %v1577_v39 = vpop.f32.mrf.mxu0 }
 0x48d   :  { %v1114_v11 = vmul.f32 %v1577_v39, %v1852_v6  ;;  %v1124_v26 = vpack.c.bf16 %v1109_v22, %v1108_v24 }
 0x48e   :  { %v1061_v40 = vpop.f32.mrf.mxu0 }
 0x48f   :  { %v1112_v15 = vmul.f32 %v1061_v40, %v1859_v12 }
 0x490   :  { %v1578_v41 = vpop.f32.mrf.mxu0 }
 0x491   :  { %v1115_v8 = vmul.f32 %v1578_v41, %v1849_v3 }
 0x492   :  { %v1064_v33 = vpop.f32.mrf.mxu0 }
 0x493   :  { %v1127_v13 = vpack.c.bf16 %v1115_v8, %v1114_v11  ;;  %v1113_v14 = vmul.f32 %v1064_v33, %v1856_v10 }
 0x494   :  { %v1581_v43 = vpop.f32.mrf.mxu0 }
 0x495   :  { %v1118_v2 = vmul.f32 %v1581_v43, %v1839_v54  ;;  %v1126_v18 = vpack.c.bf16 %v1113_v14, %v1112_v15 }
 0x496   :  { %v1077_v45 = vpop.f32.mrf.mxu0 }
 0x497   :  { %v1116_v7 = vmul.f32 %v1077_v45, %v1843_v59 }
 0x498   :  { %v1582_v46 = vpop.f32.mrf.mxu0 }
 0x499   :  { %v1119_v0 = vmul.f32 %v1582_v46, %v1837_v52 }
 0x49a   :  { %v1080_v53 = vpop.f32.mrf.mxu0 }
 0x49b   :  { %v1129_v4 = vpack.c.bf16 %v1119_v0, %v1118_v2  ;;  %v1117_v5 = vmul.f32 %v1080_v53, %v1841_v57 }
 0x49c   :  { %v1585_v48 = vpop.f32.mrf.mxu0 }
 0x49d   :  { %v1122_v56 = vmul.f32 %v1585_v48, %v1831_v44  ;;  %v1128_v9 = vpack.c.bf16 %v1117_v5, %v1116_v7 }
 0x49e   :  { %v1093_v50 = vpop.f32.mrf.mxu0 }
 0x49f   :  { %v1120_v61 = vmul.f32 %v1093_v50, %v1829_v42 }
 0x4a0   :  { %v1586_v55 = vpop.f32.mrf.mxu0 }
 0x4a1   :  { %v1123_v58 = vmul.f32 %v1586_v55, %v1835_v49 }
 0x4a2   :  { %v1096_v60 = vpop.f32.mrf.mxu0 }
 0x4a3   :  { %v1131_v62 = vpack.c.bf16 %v1123_v58, %v1122_v56  ;;  %v1121_v63 = vmul.f32 %v1096_v60, %v1833_v47 }
 0x4a5   :  { %v1130_v1 = vpack.c.bf16 %v1121_v63, %v1120_v61  ;;  %1587 = vmatprep.subr.bf16.mxu1 %v1131_v62 }
 0x4a6   :  { %1588 = vmatpush3.bf16.msra.mxu1 %v1131_v62 }
 0x4a7   :  { %1589 = vmatprep.subr.bf16.mxu1 %v1130_v1 }
 0x4aa   :  { %1590 = vmatpush3.bf16.msra.mxu1 %v1130_v1 }
 0x4ab   :  { %1591 = vmatprep.subr.bf16.mxu1 %v1129_v4 }
 0x4ae   :  { %1592 = vmatpush3.bf16.msra.mxu1 %v1129_v4 }
 0x4af   :  { %1593 = vmatprep.subr.bf16.mxu1 %v1128_v9 }
 0x4b2   :  { %1594 = vmatpush3.bf16.msra.mxu1 %v1128_v9 }
 0x4b3   :  { %1595 = vmatprep.subr.bf16.mxu1 %v1127_v13 }
 0x4b6   :  { %1596 = vmatpush3.bf16.msra.mxu1 %v1127_v13 }
 0x4b7   :  { %1597 = vmatprep.subr.bf16.mxu1 %v1126_v18 }
 0x4ba   :  { %1598 = vmatpush3.bf16.msra.mxu1 %v1126_v18 }
 0x4bb   :  { %1599 = vmatprep.subr.bf16.mxu1 %v1125_v21 }
 0x4be   :  { %1600 = vmatpush3.bf16.msra.mxu1 %v1125_v21 }
 0x4bf   :  { %1601 = vmatprep.subr.bf16.mxu1 %v1124_v26 }
 0x4c2   :  { %1602 = vmatpush3.bf16.msra.mxu1 %v1124_v26 }
 0x4c5   :  { %1604 = vmatmul.mubr.bf16.vlgmr.msra.gmra.mxu1 %v1881_v30 }
 0x4c6   :  { %1607 = vmatprep.mubr.bf16.mxu1 %v1886_v31 }
 0x4cd   :  { %1608 = vmatmul.mubr.bf16.gmra.mxu1 %v1893_v32 }
 0x4ce   :  { %1611 = vmatprep.mubr.bf16.mxu1 %v1898_v34 }
 0x4d5   :  { %1612 = vmatmul.mubr.bf16.gmra.mxu1 %v1905_v35 }
 0x4d6   :  { %1615 = vmatprep.mubr.bf16.mxu1 %v1910_v36 }
 0x4dd   :  { %1616 = vmatmul.mubr.bf16.gmra.mxu1 %v1917_v37 }
 0x585   :  { %v1605_v27 = vpop.f32.mrf.mxu1 }
 0x586   :  { %v1231_v30 = vmul.f32 %v1605_v27, %v1866_v19 }
 0x587   :  { %v1166_v29 = vpop.f32.mrf.mxu1 }
 0x588   :  { %v1254_v31 = vadd.f32 %v2081_v28, %v1231_v30  ;;  %v1229_v32 = vmul.f32 %v1166_v29, %v1873_v25 }
 0x589   :  { %v1606_v34 = vpop.f32.mrf.mxu1 }
 0x58a   :  { %1270 = vst [vmem:[%s2172_s9 + $0x10] sm:$0xff] %v1254_v31  ;;  %v1252_v35 = vadd.f32 %v2081_v28, %v1229_v32  ;;  %v1232_v36 = vmul.f32 %v1606_v34, %v1863_v16 }
 0x58b   :  { %v1169_v37 = vpop.f32.mrf.mxu1 }
 0x58c   :  { %1268 = vst [vmem:[%s2172_s9] sm:$0xff] %v1252_v35  ;;  %v1255_v19 = vadd.f32 %v2081_v28, %v1232_v36  ;;  %v1230_v51 = vmul.f32 %v1169_v37, %v1870_v23 }
 0x58d   :  { %v1609_v38 = vpop.f32.mrf.mxu1 }
 0x58e   :  { %1271 = vst [vmem:[%s2172_s9 + $0x18] sm:$0xff] %v1255_v19  ;;  %v1253_v25 = vadd.f32 %v2081_v28, %v1230_v51  ;;  %v1235_v39 = vmul.f32 %v1609_v38, %v1852_v6 }
 0x58f   :  { %v1182_v40 = vpop.f32.mrf.mxu1 }
 0x590   :  { %1269 = vst [vmem:[%s2172_s9 + $0x8] sm:$0xff] %v1253_v25  ;;  %v1258_v16 = vadd.f32 %v2081_v28, %v1235_v39  ;;  %v1233_v41 = vmul.f32 %v1182_v40, %v1859_v12 }
 0x591   :  { %v1610_v33 = vpop.f32.mrf.mxu1 }
 0x592   :  { %1274 = vst [vmem:[%s2172_s9 + $0x30] sm:$0xff] %v1258_v16  ;;  %v1256_v23 = vadd.f32 %v2081_v28, %v1233_v41  ;;  %v1236_v43 = vmul.f32 %v1610_v33, %v1849_v3 }
 0x593   :  { %v1185_v45 = vpop.f32.mrf.mxu1 }
 0x594   :  { %1272 = vst [vmem:[%s2172_s9 + $0x20] sm:$0xff] %v1256_v23  ;;  %v1259_v6 = vadd.f32 %v2081_v28, %v1236_v43  ;;  %v1234_v46 = vmul.f32 %v1185_v45, %v1856_v10 }
 0x595   :  { %v1613_v53 = vpop.f32.mrf.mxu1 }
 0x596   :  { %1275 = vst [vmem:[%s2172_s9 + $0x38] sm:$0xff] %v1259_v6  ;;  %v1257_v12 = vadd.f32 %v2081_v28, %v1234_v46  ;;  %v1239_v48 = vmul.f32 %v1613_v53, %v1839_v54 }
 0x597   :  { %v1198_v50 = vpop.f32.mrf.mxu1 }
 0x598   :  { %1273 = vst [vmem:[%s2172_s9 + $0x28] sm:$0xff] %v1257_v12  ;;  %v1262_v3 = vadd.f32 %v2081_v28, %v1239_v48  ;;  %v1237_v55 = vmul.f32 %v1198_v50, %v1843_v59 }
 0x599   :  { %v1614_v56 = vpop.f32.mrf.mxu1 }
 0x59a   :  { %1278 = vst [vmem:[%s2172_s9 + $0x50] sm:$0xff] %v1262_v3  ;;  %v1260_v10 = vadd.f32 %v2081_v28, %v1237_v55  ;;  %v1240_v58 = vmul.f32 %v1614_v56, %v1837_v52 }
 0x59b   :  { %v1201_v60 = vpop.f32.mrf.mxu1 }
 0x59c   :  { %1276 = vst [vmem:[%s2172_s9 + $0x40] sm:$0xff] %v1260_v10  ;;  %v1263_v54 = vadd.f32 %v2081_v28, %v1240_v58  ;;  %v1238_v61 = vmul.f32 %v1201_v60, %v1841_v57 }
 0x59d   :  { %v1617_v62 = vpop.f32.mrf.mxu1 }
 0x59e   :  { %1279 = vst [vmem:[%s2172_s9 + $0x58] sm:$0xff] %v1263_v54  ;;  %v1261_v59 = vadd.f32 %v2081_v28, %v1238_v61  ;;  %v1243_v63 = vmul.f32 %v1617_v62, %v1831_v44 }
 0x59f   :  { %v1214_v0 = vpop.f32.mrf.mxu1 }
 0x5a0   :  { %1277 = vst [vmem:[%s2172_s9 + $0x48] sm:$0xff] %v1261_v59  ;;  %v1266_v52 = vadd.f32 %v2081_v28, %v1243_v63  ;;  %v1241_v1 = vmul.f32 %v1214_v0, %v1829_v42 }
 0x5a1   :  { %v1618_v2 = vpop.f32.mrf.mxu1 }
 0x5a2   :  { %1282 = vst [vmem:[%s2172_s9 + $0x70] sm:$0xff] %v1266_v52  ;;  %v1264_v57 = vadd.f32 %v2081_v28, %v1241_v1  ;;  %v1244_v4 = vmul.f32 %v1618_v2, %v1835_v49 }
 0x5a3   :  { %v1217_v5 = vpop.f32.mrf.mxu1 }
 0x5a4   :  { %1280 = vst [vmem:[%s2172_s9 + $0x60] sm:$0xff] %v1264_v57  ;;  %v1267_v44 = vadd.f32 %v2081_v28, %v1244_v4  ;;  %v1242_v7 = vmul.f32 %v1217_v5, %v1833_v47 }
 0x5a6   :  { %1283 = vst [vmem:[%s2172_s9 + $0x78] sm:$0xff] %v1267_v44  ;;  %v1265_v42 = vadd.f32 %v2081_v28, %v1242_v7 }
 0x5a8   :  { %1281 = vst [vmem:[%s2172_s9 + $0x68] sm:$0xff] %v1265_v42 }

</bundles_post_ra>
